<compile_context>
chip_gen: v5e
topology: v5e:2x2
jax: 0.10.0
libtpu: 0.0.40
codegen_flags: <defaults>
</compile_context>

<pallas_src>
import jax
import jax.numpy as jnp
from jax.experimental import pallas as pl
from jax.experimental.pallas import tpu as pltpu


def _lincat_kernel(x1_ref, x2_ref, w_ref, o_ref):
    # x1_ref: (C1, ts)   x2_ref: (C2, ts)   w_ref: (C1_out, C1_in)
    # o_ref:  (C1 + C2, ts)
    c1 = x1_ref.shape[0]
    # 1x1 conv == W @ X over channels (MXU, hidden under DMA), f32 accumulation.
    y = jnp.dot(w_ref[...], x1_ref[...], preferred_element_type=jnp.float32)
    y = jnp.where(y > 0.0, y, 0.2 * y)            # LeakyReLU(0.2)  ('progan')
    # Two lane-dense slab writes instead of an in-kernel lane concatenate.
    o_ref[:c1, :] = y.astype(o_ref.dtype)
    o_ref[c1:, :] = x2_ref[...].astype(o_ref.dtype)


def _round_up(x, m):
    return (x + m - 1) // m * m


def lin_cat_combiner(x1_nchw, x2_nchw, conv_weight, *,
                     ts_max=16384, vmem_budget_bytes=24 * 1024 * 1024):
    """x1_nchw: (N, C1, H, W), x2_nchw: (N, C2, H, W),
    conv_weight: (C1, C1, 1, 1) as in nn.Conv2d (out, in, kh, kw), bias=False.
    Returns (N, C1 + C2, H, W)."""
    N, C1, H, W = x1_nchw.shape
    C2 = x2_nchw.shape[1]
    HW = H * W
    itemsize = x1_nchw.dtype.itemsize

    # --- spatial tile size: as big as possible, bounded by a VMEM budget that
    #     also fits v7x (per-step, double-buffered: x1 + x2 + out blocks).
    bytes_per_col = 2 * 2 * (C1 + C2) * itemsize          # 2x buffers * (in+out)
    ts_vmem = max(128, (vmem_budget_bytes // bytes_per_col) // 128 * 128)
    ts = min(_round_up(HW, 128), ts_max, ts_vmem)          # multiple of 128
    hw_pad = _round_up(HW, ts)

    # --- flatten spatial dims (free, contiguous) and pad only if needed.
    x1f = x1_nchw.reshape(N, C1, HW)
    x2f = x2_nchw.reshape(N, C2, HW)
    if hw_pad != HW:
        pad = hw_pad - HW
        x1f = jnp.pad(x1f, ((0, 0), (0, 0), (0, pad)))
        x2f = jnp.pad(x2f, ((0, 0), (0, 0), (0, pad)))

    # (out, in, 1, 1) -> (out, in); kernel computes W @ X directly.
    w2d = conv_weight[:, :, 0, 0]

    grid = (N, hw_pad // ts)

    bytes_accessed = (N * hw_pad * (C1 + C2) * 2 + C1 * C1) * itemsize
    cost = pl.CostEstimate(
        flops=2 * N * hw_pad * C1 * C1,
        transcendentals=0,
        bytes_accessed=bytes_accessed,
    )

    out_flat = pl.pallas_call(
        _lincat_kernel,
        out_shape=jax.ShapeDtypeStruct((N, C1 + C2, hw_pad), x1_nchw.dtype),
        grid_spec=pltpu.PrefetchScalarGridSpec(
            num_scalar_prefetch=0,
            grid=grid,
            in_specs=[
                pl.BlockSpec((None, C1, ts), lambda n, s: (n, 0, s)),
                pl.BlockSpec((None, C2, ts), lambda n, s: (n, 0, s)),
                pl.BlockSpec((C1, C1), lambda n, s: (0, 0)),  # weight stays resident
            ],
            out_specs=pl.BlockSpec((None, C1 + C2, ts), lambda n, s: (n, 0, s)),
        ),
        compiler_params=pltpu.CompilerParams(
            # both axes independent -> shard across TensorCores (v7x megacore)
            dimension_semantics=("parallel", "parallel"),
        ),
        cost_estimate=cost,
    )(x1f, x2f, w2d)

    # strip spatial padding (no-op when HW already tile-aligned) and unflatten.
    # NOTE: output stays in the caller's dtype; carrying x2/out in bf16 would be
    # a model-level choice (near-proportional HBM win on v6e/v7x).
    return out_flat[:, :, :HW].reshape(N, C1 + C2, H, W)


def _reference(x1_nchw, x2_nchw, conv_weight):
    # plain-JAX reference for the same forward pass
    w2d = conv_weight[:, :, 0, 0]                      # (out, in)
    y = jnp.einsum("nchw,oc->nohw", x1_nchw, w2d)      # 1x1 conv, no bias
    y = jnp.where(y > 0, y, 0.2 * y)                   # LeakyReLU(0.2)
    return jnp.concatenate([y, x2_nchw], axis=1)


if __name__ == "__main__":
    key = jax.random.PRNGKey(0)
    k1, k2, k3 = jax.random.split(key, 3)

    # hparams.image_channels = 4, architecture = 'progan'
    N, C1, C2, H, W = 2, 4, 4, 16, 16

    x1 = jax.random.normal(k1, (N, C1, H, W), dtype=jnp.float32)
    x2 = jax.random.normal(k2, (N, C2, H, W), dtype=jnp.float32)

    # Deterministic conv weight, Conv2d-style shape (out, in, 1, 1), bias=False.
    fan_in = C1  # kernel_size = 1
    bound = 1.0 / (fan_in ** 0.5)
    conv_w = jax.random.uniform(
        k3, (C1, C1, 1, 1), dtype=jnp.float32, minval=-bound, maxval=bound
    )

    out = jax.block_until_ready(lin_cat_combiner(x1, x2, conv_w))
    ref = _reference(x1, x2, conv_w)

    assert out.shape == (N, C1 + C2, H, W)
    assert jnp.allclose(out, ref, atol=1e-5, rtol=1e-5)
    print("KERNEL_OK")
</pallas_src>

<mosaic_0001>
module attributes {stable_mosaic.version = 11 : i64} {
  func.func @_lincat_kernel(%arg0: i32, %arg1: i32, %arg2: memref<1x4x256xf32, #tpu.memory_space<vmem>>, %arg3: memref<1x4x256xf32, #tpu.memory_space<vmem>>, %arg4: memref<4x4xf32, #tpu.memory_space<vmem>>, %arg5: memref<1x8x256xf32, #tpu.memory_space<vmem>>) attributes {dimension_semantics = [#tpu.dimension_semantics<parallel>, #tpu.dimension_semantics<parallel>], iteration_bounds = array<i64: 2, 1>, scalar_prefetch = 0 : i64, scratch_operands = 0 : i64, tpu.core_type = #tpu.core_type<tc>, window_params = [{transform_indices = @transform_0, window_bounds = array<i64: 1, 4, 256>}, {transform_indices = @transform_1, window_bounds = array<i64: 1, 4, 256>}, {pipeline_mode = #tpu.pipeline_mode<synchronous>, transform_indices = @transform_2, window_bounds = array<i64: 4, 4>}, {transform_indices = @transform_3, window_bounds = array<i64: 1, 8, 256>}]} {
    %c0 = arith.constant 0 : index
    %c0_0 = arith.constant 0 : index
    %0 = vector.load %arg4[%c0, %c0_0] : memref<4x4xf32, #tpu.memory_space<vmem>>, vector<4x4xf32>
    %c0_1 = arith.constant 0 : index
    %c0_2 = arith.constant 0 : index
    %c0_3 = arith.constant 0 : index
    %1 = vector.load %arg2[%c0_1, %c0_2, %c0_3] : memref<1x4x256xf32, #tpu.memory_space<vmem>>, vector<1x4x256xf32>
    %2 = vector.shape_cast %1 : vector<1x4x256xf32> to vector<4x256xf32>
    %cst = arith.constant dense<0.000000e+00> : vector<4x256xf32>
    %3 = tpu.matmul %0, %2, %cst {dimension_numbers = #tpu.dot_dimension_numbers<[1], [0], [0], [1], [0, 0, 1, 1], [], []>} : vector<4x4xf32>, vector<4x256xf32>, vector<4x256xf32> -> vector<4x256xf32>
    %cst_4 = arith.constant 0.000000e+00 : f32
    %4 = vector.broadcast %cst_4 : f32 to vector<4x256xf32>
    %5 = arith.cmpf ogt, %3, %4 : vector<4x256xf32>
    %cst_5 = arith.constant 2.000000e-01 : f32
    %6 = vector.broadcast %cst_5 : f32 to vector<4x256xf32>
    %7 = arith.mulf %6, %3 : vector<4x256xf32>
    %8 = arith.select %5, %3, %7 : vector<4x256xi1>, vector<4x256xf32>
    %c0_6 = arith.constant 0 : index
    %c0_7 = arith.constant 0 : index
    %c0_8 = arith.constant 0 : index
    %9 = vector.load %arg5[%c0_6, %c0_7, %c0_8] : memref<1x8x256xf32, #tpu.memory_space<vmem>>, vector<1x4x256xf32>
    %10 = vector.shape_cast %9 : vector<1x4x256xf32> to vector<4x256xf32>
    %11 = vector.shape_cast %8 : vector<4x256xf32> to vector<1x4x256xf32>
    tpu.vector_store %arg5[%c0_6, %c0_7, %c0_8], %11 {strides = array<i32>} : memref<1x8x256xf32, #tpu.memory_space<vmem>>, vector<1x4x256xf32>,
    %c0_9 = arith.constant 0 : index
    %c0_10 = arith.constant 0 : index
    %c0_11 = arith.constant 0 : index
    %12 = vector.load %arg3[%c0_9, %c0_10, %c0_11] : memref<1x4x256xf32, #tpu.memory_space<vmem>>, vector<1x4x256xf32>
    %13 = vector.shape_cast %12 : vector<1x4x256xf32> to vector<4x256xf32>
    %c0_12 = arith.constant 0 : index
    %c4 = arith.constant 4 : index
    %c0_13 = arith.constant 0 : index
    %14 = vector.load %arg5[%c0_12, %c4, %c0_13] : memref<1x8x256xf32, #tpu.memory_space<vmem>>, vector<1x4x256xf32>
    %15 = vector.shape_cast %14 : vector<1x4x256xf32> to vector<4x256xf32>
    %16 = vector.shape_cast %13 : vector<4x256xf32> to vector<1x4x256xf32>
    tpu.vector_store %arg5[%c0_12, %c4, %c0_13], %16 {strides = array<i32>} : memref<1x8x256xf32, #tpu.memory_space<vmem>>, vector<1x4x256xf32>,
    return
  }
  func.func @transform_0(%arg0: i32, %arg1: i32) -> (i32, i32, i32) {
    %c0_i32 = arith.constant 0 : i32
    %c0_i32_0 = arith.constant 0 : i32
    return %arg0, %c0_i32, %arg1 : i32, i32, i32
  }
  func.func @transform_1(%arg0: i32, %arg1: i32) -> (i32, i32, i32) {
    %c0_i32 = arith.constant 0 : i32
    %c0_i32_0 = arith.constant 0 : i32
    return %arg0, %c0_i32, %arg1 : i32, i32, i32
  }
  func.func @transform_2(%arg0: i32, %arg1: i32) -> (i32, i32) {
    %c0_i32 = arith.constant 0 : i32
    %c0_i32_0 = arith.constant 0 : i32
    %c0_i32_1 = arith.constant 0 : i32
    return %c0_i32, %c0_i32_0 : i32, i32
  }
  func.func @transform_3(%arg0: i32, %arg1: i32) -> (i32, i32, i32) {
    %c0_i32 = arith.constant 0 : i32
    %c0_i32_0 = arith.constant 0 : i32
    return %arg0, %c0_i32, %arg1 : i32, i32, i32
  }
}

</mosaic_0001>

<bundles_post_ra>
// kernel: tpu_custom_call.1
= control target key start
LH: loop header
LB: loop body
LE: loop exit
PB: predicated region body
PF: predicated region fallthrough
CT: control target
= control target key end

     0   :  { %s943_s0 = inlined_call_operand.hbm [shape: f32[2,4,256], index: 0, kind: input, shape index: {}]   ;;  %s944_s1 = inlined_call_operand.hbm [shape: f32[2,4,256], index: 1, kind: input, shape index: {}]   ;;  %s945_s2 = inlined_call_operand.hbm [shape: f32[4,4], index: 2, kind: input, shape index: {}]   ;;  %s946_s3 = inlined_call_operand.hbm [shape: f32[2,8,256], index: 3, kind: output, shape index: {}]  }
   0x1   :  { %949 = sst [smem:[#allocation16_spill]] %s945_s2 }
   0x2   :  { %8 = vsyncpa [#allocation3], 0 }
   0x3   :  { %10 = vsyncpa [#allocation3 + $0x1], 0 }
   0x4   :  { %11 = vsyncpa [#allocation6], 0 }
   0x5   :  { %13 = vsyncpa [#allocation6 + $0x1], 0 }
   0x6   :  { %14 = vsyncpa [#allocation4], 0 }
   0x7   :  { %16 = vsyncpa [#allocation4 + $0x1], 0  ;;  %s788_s12 = smov 0   ;;  %s790_s13 = smov 0  }
   0x8   :  { %s792_s14 = smov 0   ;;  %s794_s15 = smov 0  }
   0x9   :  { %s796_s16 = smov 0   ;;  %s798_s17 = smov 0  }
   0xa LB: > { %950 = sst [smem:[#allocation13_spill]] %s761_s16  ;;  %s819_s18 = sadd.s32 4294967295, %s765_s17   ;;  %s765_s17 = sphi %s798_s17, %s22_s17   ;;  %s761_s16 = sphi %s796_s16, %s961_s16   ;;  %s757_s15 = sphi %s794_s15, %s960_s15   ;;  %s753_s14 = sphi %s792_s14, %s964_s14   ;;  %s749_s13 = sphi %s790_s13, %s963_s13   ;;  %s745_s12 = sphi %s788_s12, %s962_s12  }
   0xb   : > { %s480_s19 = sadd.s32 4294967294, %s765_s17   ;;  %p56_p0 = scmp.ne.s32.totalorder %s749_s13, %s745_s12 }
   0xc   : > { %p57_p1 = scmp.eq.s32.totalorder %s819_s18, 0  ;;  %p131_p2 = scmp.eq.s32.totalorder %s819_s18, 1 }
   0xd   : > { %p137_p3 = scmp.eq.s32.totalorder %s480_s19, 1  ;;  %p481_p5 = scmp.ge.s32.totalorder %s765_s17, 1 }
   0xe   : > { %p828_p4 = por %p57_p1, %p56_p0  ;;  %p144_p7 = scmp.lt.s32.totalorder %s765_s17, 3 }
   0xf   : > { %p833_p6 = por %p137_p3, %p56_p0  ;;  %s953_s2 = sld [smem:[#allocation16_spill]] }
  0x10   : > { %p841_p8 = pnand %p481_p5, %p144_p7  ;;  %p483_p9 = scmp.ge.s32.totalorder %s765_s17, 2 }
  0x11   : > { %s767_s26 = smov [#allocation7]   ;;  %s34_s28 = sadd.s32 1, %s761_s16 }
  0x12   : > { %p517_p10 = pneg %p841_p8  ;;  %s158_s27 = sshll.u32 %s767_s26, 4  ;;  %s159_s27 = int_to_ptr.vmem [resolvable:$true] %s158_s27 }
  0x13   : > { %p36_p12 = scmp.ge.s32.totalorder %s34_s28, 2  ;;  %s43_s29 = sadd.s32 1, %s753_s14 }
  0x14   : > { %p518_p11 = pnand %p517_p10, %p57_p1  ;;  %p50_p13 = scmp.ne.s32.totalorder %s753_s14, %s749_s13 }
  0x15   : > { %s156_s24 = sshll.u32 %s953_s2, 4  ;;  %p51_p0 = scmp.eq.s32.totalorder %s765_s17, 0  ;;  %s157_s24 = int_to_ptr.hbm [resolvable:$true] %s156_s24 }
  0x16   : > { %520 = dma.hbm_to_vmem [thread:$0]  (!%p518_p11), %s157_s24, 64, %s159_s27, [#allocation6]  }
  0x17   : > { %s966_s28 = smov (%p36_p12, %s34_s28), 0  ;;  %p857_p3 = por %p51_p0, %p50_p13 }
  0x18   : > { %955 = sst [smem:[#allocation14_spill]] %s966_s28  ;;  %p863_p5 = por %p131_p2, %p50_p13 }
  0x19   : > { %s38_s5 = ssub.s32 %s761_s16, %s966_s28  ;;  %p533_p7 = scmp.lt.s32.totalorder %s765_s17, 2 }
  0x1a   : > { %p41_p10 = scmp.eq.s32.totalorder %s38_s5, 0  ;;  %s169_s6 = sand.u32 1, %s753_s14  }
  0x1b   : > { %s484_s7 = sshll.u32 %s169_s6, 3  ;;  %s504_s9 = sshll.u32 %s761_s16, 3 }
  0x1c   : > { %s872_s8 = scalar_select %p41_p10, %s753_s14, %s43_s29  }
  0x1d   : > { %s180_s19 = scalar_lea.hbm %s943_s0, %s504_s9  ;;  %s173_s22 = scalar_lea.vmem [#allocation2], %s484_s7 }
  0x1e   : > { %958 = sst [smem:[#allocation15_spill]] %s872_s8  ;;  %s184_s23 = sshll.u32 %s173_s22, 4  ;;  %s185_s23 = int_to_ptr.vmem [resolvable:$true] %s184_s23 }
  0x1f   : > { %s182_s24 = sshll.u32 %s180_s19, 4  ;;  %p522_p2 = pnand %p533_p7, %p857_p3  ;;  %s183_s24 = int_to_ptr.hbm [resolvable:$true] %s182_s24 }
  0x20   : > { %s202_s5 = scalar_lea.hbm %s944_s1, %s504_s9  ;;  %s191_s2 = sand.u32 1, %s765_s17  }
  0x21   : > { %s170_s28 = scalar_lea.sflag [#allocation3], %s169_s6  ;;  %s204_s29 = sshll.u32 %s202_s5, 4  ;;  %s205_s29 = int_to_ptr.hbm [resolvable:$true] %s204_s29 }
  0x22   : > { %524 = dma.hbm_to_vmem [thread:$0]  (!%p522_p2), %s183_s24, 128, %s185_s23, %s170_s28  }
  0x23   : > { %s195_s16 = scalar_lea.vmem [#allocation5], %s484_s7  ;;  %s192_s10 = scalar_lea.sflag [#allocation6], %s191_s2 }
  0x24   : > { %s206_s8 = sshll.u32 %s195_s16, 4  ;;  %215 = sbr.rel (%p841_p8) target bundleno = 190 (0xbe), region = 32  ;;  %s207_s8 = int_to_ptr.vmem [resolvable:$true] %s206_s8 }
  0x25   : > { %527 = dma.hbm_to_vmem [thread:$0]  (!%p522_p2), %s205_s29, 128, %s207_s8, %s192_s10  }
  0x26   : > { %s887_s30 = sand.u32 (!%p841_p8), 1, %s749_s13  }
  0x27   : > { %s491_s9 = sshll.u32 (!%p841_p8), %s887_s30, 3  ;;  %s218_s11 = scalar_lea.sflag (!%p841_p8), [#allocation3], %s887_s30 }
  0x28   : > { %s221_s6 = scalar_lea.vmem (!%p841_p8), [#allocation2], %s491_s9 }
  0x29   : > { %728 = dma.done.wait (%p828_p4), %s218_s11, 128  }
  0x2a   : > { %730 = vsyncadd (%p828_p4), %s218_s11, 4294967168  ;;  %s227_s2 = sand.u32 1, %s819_s18   ;;  %s231_s25 = scalar_lea.vmem [#allocation5], %s491_s9 }
  0x2b   : > { %s228_s16 = scalar_lea.sflag [#allocation6], %s227_s2 }
  0x2c   : > { %732 = dma.done.wait (%p828_p4), %s228_s16, 128  }
  0x2d   : > { %734 = vsyncadd (%p828_p4), %s228_s16, 4294967168 }
  0x2e   : > { %736 = dma.done.wait (%p57_p1), [#allocation6], 64  }
  0x2f   : > { %738 = vsyncadd (%p57_p1), [#allocation6], 4294967232  ;;  %v269_v0 = vld [vmem:[%s221_s6] sm:$0xff]  ;;  %vm278_vm0 = vcmask 1043456   ;;  %v331_v1 = vld [vmem:[%s231_s25] sm:$0xff]  ;;  %vm274_vm1 = vcmask 31744  }
  0x30   : > { %271 = vst [vmem:[#allocation1] ss:$2 sm:$0xff] %v269_v0  ;;  %v268_v2 = vld [vmem:[#allocation7] sm:$0xf]  ;;  %s494_s20 = sshll.u32 %s887_s30, 4  ;;  %s506_s28 = sshll.u32 %s757_s15, 4 }
  0x31   : > { %s264_s18 = scalar_lea.vmem [#allocation8], %s494_s20  ;;  %s355_s19 = scalar_lea.hbm %s946_s3, %s506_s28 }
  0x32   : > { %s357_s22 = sshll.u32 %s264_s18, 4  ;;  %s359_s23 = sshll.u32 %s355_s19, 4  ;;  %s358_s22 = int_to_ptr.vmem [resolvable:$true] %s357_s22  ;;  %s360_s23 = int_to_ptr.hbm [resolvable:$true] %s359_s23 }
  0x33   : > { %s342_s15 = scalar_lea.sflag [#allocation4], %s887_s30  ;;  %s689_s24 = sshra.s32 %s360_s23, 4  ;;  %s690_s24 = int_to_ptr.hbm [resolvable:$true] %s689_s24 }
  0x34   : > { %s691_s26 = scalar_lea.hbm %s690_s24, 16  ;;  %s695_s29 = scalar_lea.hbm %s946_s3, 32 }
  0x35   : > { %p692_p1 = scmp.ne.s32.totalorder %s690_s24, %s691_s26  ;;  %p696_p11 = scmp.lt.s32.totalorder %s690_s24, %s946_s3 }
  0x36   : > { %p697_p12 = scmp.lt.s32.totalorder %s695_s29, %s691_s26 }
  0x37   : > { %v272_v3 = vld.sshfl [vmem:[#allocation1] sm:$0xff pattern:$0x75316420]  ;;  %v273_v4 = vld.sshfl [vmem:[#allocation1 + $0x8] sm:$0xff pattern:$0x75316420]  ;;  %p693_p4 = pnand %p692_p1, %p863_p5 }
  0x38   : > { %495 = vmatpush.msk.msra.mxu0 %vm278_vm0, %v272_v3  ;;  %497 = vmatpush.msk.msra.mxu1 %vm278_vm0, %v273_v4  ;;  %334 = vst [vmem:[#allocation1 + $0x1] ss:$2 sm:$0xff] %v331_v1  ;;  %p698_p13 = por %p697_p12, %p696_p11 }
  0x39   : > { %496 = vmatmul.msk.f32.vlgmr.msra.gmra.mxu0 %vm274_vm1, %v268_v2  ;;  %498 = vmatmul.msk.f32.vlgmr.msra.gmra.mxu1 %vm274_vm1, %v268_v2  ;;  %p694_p8 = pneg %p693_p4 }
  0x3b   : > { %p699_p0 = pnand %p698_p13, %p694_p8 }
  0x3f   : > { %v335_v5 = vld.sshfl [vmem:[#allocation1] sm:$0xff pattern:$0x75316420]  ;;  %v336_v6 = vld.sshfl [vmem:[#allocation1 + $0x8] sm:$0xff pattern:$0x75316420] }
  0x40   : > { %339 = vst [vmem:[%s264_s18] sm:$0xf0] %v335_v5 }
  0x41   : > { %340 = vst [vmem:[%s264_s18 + $0x8] sm:$0xf0] %v336_v6 }
  0xb6   : > { %v300_v7 = vpop.f32.mrf.mxu0  ;;  %v320_v8 = vpop.f32.mrf.mxu1 }
  0xb7   : > { %vm323_vm2 = vcmp.gt.f32.partialorder %v300_v7, 0.0  ;;  %v325_v9 = vmul.f32 0.2, %v300_v7  ;;  %vm324_vm3 = vcmp.gt.f32.partialorder %v320_v8, 0.0  ;;  %v326_v10 = vmul.f32 0.2, %v320_v8 }
  0xb9   : > { %v327_v11 = vsel %vm323_vm2, %v300_v7, %v325_v9  ;;  %v328_v12 = vsel %vm324_vm3, %v320_v8, %v326_v10 }
  0xba   : > { %329 = vst [vmem:[%s264_s18] sm:$0xf] %v327_v11 }
  0xbb   : > { %330 = vst [vmem:[%s264_s18 + $0x8] sm:$0xf] %v328_v12 }
  0xbc   : > { %702 = shalt.err (!%p699_p0)
}
  0xbd   : > { %515 = dma.vmem_to_hbm [thread:$0]  (%p863_p5), %s358_s22, 256, %s360_s23, %s342_s15  }
  0xbe PF: > { %s371_s30 = sand.u32 1, %s745_s12   ;;  %p529_p3 = pnand %p483_p9, %p833_p6 }
  0xbf   : > { %s372_s11 = scalar_lea.sflag [#allocation4], %s371_s30 }
  0xc0   : > { %p530_p7 = pneg %p529_p3 }
  0xc2   : > { %740 = dma.done.wait (%p530_p7), %s372_s11, 256  }
  0xc3   : > { %742 = vsyncadd (%p530_p7), %s372_s11, 4294967040  ;;  %s22_s17 = sadd.s32 1, %s765_s17   ;;  %s959_s6 = sld [smem:[#allocation15_spill]] }
  0xc4   : > { %p19_p10 = scmp.ge.s32.totalorder %s22_s17, 4   ;;  %s960_s15 = sld [smem:[#allocation13_spill]] }
  0xc5   : > { %s961_s16 = sld [smem:[#allocation14_spill]]  ;;  %s962_s12 = smov %s749_s13 }
  0xc6   : > { %s963_s13 = smov %s753_s14  ;;  %21 = sbr.rel (!%p19_p10) target bundleno = 10 (0xa), region = 95 }
  0xc9   : > { %s964_s14 = smov %s959_s6 }
  0xcb   :  { %378 = vsyncpa [#allocation3], 1 }
  0xcc   :  { %380 = vsyncpa [#allocation3 + $0x1], 1 }
  0xcd   :  { %381 = vsyncpa [#allocation6], 1 }
  0xce   :  { %383 = vsyncpa [#allocation6 + $0x1], 1 }
  0xcf   :  { %384 = vsyncpa [#allocation4], 1 }
  0xd0   :  { %386 = vsyncpa [#allocation4 + $0x1], 1 }

</bundles_post_ra>
